<compile_context>
chip_gen: v7x
topology: tpu7x:2x2x1
jax: 0.10.0
libtpu: 0.0.40
codegen_flags: <defaults>
</compile_context>

<pallas_src>
import functools

import jax
import jax.numpy as jnp
from jax.experimental import pallas as pl
from jax.experimental.pallas import tpu as pltpu


def _combined_loss_kernel(row_ref, col_ref, out_ref, tgt_ref, part_ref, *, H, W):
    """Per-batch-tile partial sums for CombinedLoss.

    out_ref, tgt_ref : (BB, HWp)       -- images flattened row-major on lanes
    row_ref, col_ref : (1, HWp) int32  -- (row, col) of each flat position
                                          (lane padding has row = col = 0 and a
                                          NaN target, so it drops out of every
                                          mask and every neighbour read).
    part_ref         : (1, 4) f32 SMEM -- [mse_sum, mse_cnt, gsum, gcnt]
    """
    out = out_ref[...].astype(jnp.float32)
    tgt = tgt_ref[...].astype(jnp.float32)
    bb, hwp = out.shape

    # Boundary masks: compare once on the (1, HWp) maps, broadcast once.
    row = row_ref[...]
    col = col_ref[...]
    c_gt0 = jnp.broadcast_to(col > 0, (bb, hwp))
    c_ltw = jnp.broadcast_to(col < (W - 1), (bb, hwp))
    r_gt0 = jnp.broadcast_to(row > 0, (bb, hwp))
    r_lth = jnp.broadcast_to(row < (H - 1), (bb, hwp))

    # Zero-padded 3x3 neighbour reads in the flattened layout: lane-roll by 1
    # (column shift) / by W (row shift) on the XLU + boundary masks.  Every
    # wrap-around read (row boundary / lane padding) is killed by its mask, and
    # jnp.where (select) does not propagate NaN from the untaken branch.
    def nbr_left(x):    # value at (r, c-1); 0 outside the image
        return jnp.where(c_gt0, pltpu.roll(x, 1, axis=1), 0.0)

    def nbr_right(x):   # (r, c+1)
        return jnp.where(c_ltw, pltpu.roll(x, hwp - 1, axis=1), 0.0)

    def nbr_up(x):      # (r-1, c)
        return jnp.where(r_gt0, pltpu.roll(x, W, axis=1), 0.0)

    def nbr_down(x):    # (r+1, c)
        return jnp.where(r_lth, pltpu.roll(x, hwp - W, axis=1), 0.0)

    nan_t = jnp.isnan(tgt)
    valid = jnp.logical_not(nan_t)
    d = out - tgt                       # shared by the MSE and the Sobel pass

    # --- masked MSE partials.  A NaN output pixel at a valid target position
    #     propagates through the sum and is mapped to 0.0 by the final isnan
    #     guard (same behaviour as the PyTorch reference).
    mse_sum = jnp.sum(jnp.where(valid, d * d, 0.0))
    mse_cnt = jnp.sum(valid.astype(jnp.float32))

    # --- "any NaN in the 3x3 target window" (F.conv2d propagates NaN through
    #     zero-weight taps as well).  Separable OR via float accumulation.
    ntf = nan_t.astype(jnp.float32)
    rown = nbr_up(ntf) + ntf + nbr_down(ntf)
    winn = nbr_left(rown) + rown + nbr_right(rown)

    # grad_mask of the reference == ~isnan(target) & (row > 0) & (col > 0);
    # ~isnan(target) at the center is implied by the NaN-free window.
    include = jnp.logical_and(jnp.logical_and(r_gt0, c_gt0), winn == 0.0)

    # --- Sobel of the difference (sobel(out) - sobel(tgt) == sobel(out - tgt)
    #     on the NaN-free windows we keep), factorized to 6 rolls:
    #     sobel_x = [1,2,1]^T x [1,0,-1],  sobel_y = [1,0,-1]^T x [1,2,1].
    u = nbr_up(d)
    w = nbr_down(d)
    s = u + 2.0 * d + w
    b = u - w
    gx = nbr_left(s) - nbr_right(s)
    gy = nbr_left(b) + 2.0 * b + nbr_right(b)

    gsum = jnp.sum(jnp.where(include, gx * gx + gy * gy, 0.0))
    gcnt = jnp.sum(include.astype(jnp.float32))

    part_ref[0, 0] = mse_sum
    part_ref[0, 1] = mse_cnt
    part_ref[0, 2] = gsum
    part_ref[0, 3] = gcnt


def combined_loss(output, target, alpha=1.0):
    """output, target: (N, C, H, W) arrays (NCHW, like the PyTorch module)."""
    N, C, H, W = output.shape
    # The reference's F.conv2d(..., groups=C) with a (1, 1, 3, 3) weight only
    # type-checks for C == 1.
    assert C == 1, "CombinedLoss.compute_gradient requires single-channel input"

    B = N * C
    HW = H * W
    HWp = ((HW + 127) // 128) * 128          # lane-dense, 128-aligned last dim
    lane_pad = HWp - HW

    # Keep the input dtype (bf16 stays bf16 -> half the HBM read traffic);
    # the kernel upcasts to f32 internally.
    out_f = output.reshape(B, HW)
    tgt_f = target.reshape(B, HW)

    # Batch tile size: ~1 MiB of f32 image data per input block; capped so that
    # T >= 2 whenever B >= 2 (both v7x TensorCores get work).
    max_bb = max(1, (1 << 20) // (HWp * 4))
    if B >= 2:
        max_bb = min(max_bb, -(-B // 2))
    max_bb = min(max_bb, B)
    # Prefer a tile size that divides B exactly (no batch-pad HBM copy).
    BB = 1
    for cand in range(max_bb, 0, -1):
        if B % cand == 0:
            BB = cand
            break
    if BB * 2 < max_bb:                      # no decent divisor -> pad instead
        BB = max_bb
    T = -(-B // BB)
    pad_b = T * BB - B

    # Single fused pad per tensor (and none at all when HW % 128 == 0 and BB | B).
    # Padding: output 0, target NaN -> excluded from every mask / count.
    if pad_b or lane_pad:
        out_f = jnp.pad(out_f, ((0, pad_b), (0, lane_pad)))
        tgt_f = jnp.pad(tgt_f, ((0, pad_b), (0, lane_pad)),
                        constant_values=jnp.nan)
    out3 = out_f.reshape(T, BB, HWp)
    tgt3 = tgt_f.reshape(T, BB, HWp)

    # Flat-index -> (row, col) maps, (1, HWp) int32 (lane padding gets 0s).
    flat = jnp.arange(HWp, dtype=jnp.int32)
    in_img = flat < HW
    row_ids = jnp.where(in_img, flat // W, 0).reshape(1, HWp)
    col_ids = jnp.where(in_img, flat % W, 0).reshape(1, HWp)

    kernel = functools.partial(_combined_loss_kernel, H=H, W=W)
    partials = pl.pallas_call(
        kernel,
        out_shape=jax.ShapeDtypeStruct((T, 1, 4), jnp.float32),
        grid=(T,),
        in_specs=[
            pl.BlockSpec((1, HWp), lambda i: (0, 0)),             # row map
            pl.BlockSpec((1, HWp), lambda i: (0, 0)),             # col map
            pl.BlockSpec((None, BB, HWp), lambda i: (i, 0, 0)),   # output tile
            pl.BlockSpec((None, BB, HWp), lambda i: (i, 0, 0)),   # target tile
        ],
        out_specs=pl.BlockSpec((None, 1, 4), lambda i: (i, 0, 0),
                               memory_space=pltpu.MemorySpace.SMEM),
        compiler_params=pltpu.CompilerParams(
            dimension_semantics=("parallel",),
            vmem_limit_bytes=32 * 1024 * 1024,
        ),
    )(row_ids, col_ids, out3, tgt3)

    # Tiny epilogue in plain JAX: combine per-tile partials, take the means and
    # reproduce the "if torch.isnan(combined_loss): return 0" guard (NaN from an
    # empty mask (0/0) or from NaN output pixels propagates into p).
    p = jnp.sum(partials.reshape(T, 4), axis=0)
    mse_loss = p[0] / p[1]
    grad_loss = p[2] / p[3]
    combined = mse_loss + jnp.float32(alpha) * grad_loss
    return jnp.where(jnp.isnan(combined), jnp.float32(0.0), combined)


def _reference_combined_loss(output, target, alpha):
    """Pure-JAX mirror of the PyTorch CombinedLoss forward (correctness check)."""
    out = output.astype(jnp.float32)
    tgt = target.astype(jnp.float32)
    _, _, H, W = out.shape

    valid = ~jnp.isnan(tgt)
    d = out - tgt
    mse = jnp.sum(jnp.where(valid, d * d, 0.0)) / jnp.sum(valid).astype(jnp.float32)

    def shift(img, di, dj, fill=0.0):
        # img value at (r + di - 1, c + dj - 1); `fill` outside (zero padding).
        p = jnp.pad(img, ((0, 0), (0, 0), (1, 1), (1, 1)), constant_values=fill)
        return p[:, :, di:di + H, dj:dj + W]

    sobel_x = ((1.0, 0.0, -1.0), (2.0, 0.0, -2.0), (1.0, 0.0, -1.0))
    sobel_y = ((1.0, 2.0, 1.0), (0.0, 0.0, 0.0), (-1.0, -2.0, -1.0))

    def conv3(img, kern):
        acc = jnp.zeros_like(img)
        for di in range(3):
            for dj in range(3):
                acc = acc + kern[di][dj] * shift(img, di, dj)
        return acc

    ogx, ogy = conv3(out, sobel_x), conv3(out, sobel_y)
    tgx, tgy = conv3(tgt, sobel_x), conv3(tgt, sobel_y)

    # F.conv2d propagates NaN through zero-weight taps, so target_grad_* is NaN
    # wherever any pixel of the 3x3 target window is NaN.
    nan_t = jnp.isnan(tgt)
    win_nan = jnp.zeros_like(nan_t)
    for di in range(3):
        for dj in range(3):
            win_nan = win_nan | shift(nan_t, di, dj, fill=False)

    gm = valid
    gm = gm & jnp.pad(gm[:, :, 1:, :], ((0, 0), (0, 0), (1, 0), (0, 0)))
    gm = gm & jnp.pad(gm[:, :, :, 1:], ((0, 0), (0, 0), (0, 0), (1, 0)))
    inc = gm & ~win_nan

    cnt = jnp.sum(inc).astype(jnp.float32)
    lx = jnp.sum(jnp.where(inc, (ogx - tgx) ** 2, 0.0)) / cnt
    ly = jnp.sum(jnp.where(inc, (ogy - tgy) ** 2, 0.0)) / cnt

    combined = mse + jnp.float32(alpha) * (lx + ly)
    return jnp.where(jnp.isnan(combined), jnp.float32(0.0), combined)


if __name__ == "__main__":
    key = jax.random.PRNGKey(0)
    k1, k2, k3 = jax.random.split(key, 3)

    N, C, H, W = 2, 1, 16, 16
    output = jax.random.normal(k1, (N, C, H, W), dtype=jnp.float32)
    target = jax.random.normal(k2, (N, C, H, W), dtype=jnp.float32)
    # Sprinkle a few NaNs into target to exercise the NaN masking path.
    nan_mask = jax.random.uniform(k3, (N, C, H, W)) < 0.1
    target = jnp.where(nan_mask, jnp.float32(jnp.nan), target)

    loss = combined_loss(output, target, alpha=1.0)
    loss = jax.block_until_ready(loss)

    ref = _reference_combined_loss(output, target, 1.0)
    ref = jax.block_until_ready(ref)

    assert bool(jnp.isfinite(loss)), f"unexpected non-finite loss: {loss}"
    assert bool(jnp.allclose(loss, ref, rtol=1e-4, atol=1e-5)), (
        f"kernel {loss} != reference {ref}")
    print("KERNEL_OK")
</pallas_src>

<mosaic_0001>
module attributes {stable_mosaic.version = 11 : i64} {
  func.func @_combined_loss_kernel(%arg0: i32, %arg1: memref<1x256xi32, #tpu.memory_space<vmem>>, %arg2: memref<1x256xi32, #tpu.memory_space<vmem>>, %arg3: memref<1x1x256xf32, #tpu.memory_space<vmem>>, %arg4: memref<1x1x256xf32, #tpu.memory_space<vmem>>, %arg5: memref<1x1x4xf32, #tpu.memory_space<smem>>) attributes {dimension_semantics = [#tpu.dimension_semantics<parallel>], iteration_bounds = array<i64: 2>, scalar_prefetch = 0 : i64, scratch_operands = 0 : i64, tpu.core_type = #tpu.core_type<tc>, window_params = [{pipeline_mode = #tpu.pipeline_mode<synchronous>, transform_indices = @transform_0, window_bounds = array<i64: 1, 256>}, {pipeline_mode = #tpu.pipeline_mode<synchronous>, transform_indices = @transform_1, window_bounds = array<i64: 1, 256>}, {transform_indices = @transform_2, window_bounds = array<i64: 1, 1, 256>}, {transform_indices = @transform_3, window_bounds = array<i64: 1, 1, 256>}, {transform_indices = @transform_4, window_bounds = array<i64: 1, 1, 4>}]} {
    %c0 = arith.constant 0 : index
    %c0_0 = arith.constant 0 : index
    %c0_1 = arith.constant 0 : index
    %0 = vector.load %arg3[%c0, %c0_0, %c0_1] : memref<1x1x256xf32, #tpu.memory_space<vmem>>, vector<1x1x256xf32>
    %1 = vector.shape_cast %0 : vector<1x1x256xf32> to vector<1x256xf32>
    %c0_2 = arith.constant 0 : index
    %c0_3 = arith.constant 0 : index
    %c0_4 = arith.constant 0 : index
    %2 = vector.load %arg4[%c0_2, %c0_3, %c0_4] : memref<1x1x256xf32, #tpu.memory_space<vmem>>, vector<1x1x256xf32>
    %3 = vector.shape_cast %2 : vector<1x1x256xf32> to vector<1x256xf32>
    %c0_5 = arith.constant 0 : index
    %c0_6 = arith.constant 0 : index
    %4 = vector.load %arg1[%c0_5, %c0_6] : memref<1x256xi32, #tpu.memory_space<vmem>>, vector<1x256xi32>
    %c0_7 = arith.constant 0 : index
    %c0_8 = arith.constant 0 : index
    %5 = vector.load %arg2[%c0_7, %c0_8] : memref<1x256xi32, #tpu.memory_space<vmem>>, vector<1x256xi32>
    %c0_i32 = arith.constant 0 : i32
    %6 = vector.broadcast %c0_i32 : i32 to vector<1x256xi32>
    %7 = arith.cmpi sgt, %5, %6 : vector<1x256xi32>
    %c15_i32 = arith.constant 15 : i32
    %8 = vector.broadcast %c15_i32 : i32 to vector<1x256xi32>
    %9 = arith.cmpi slt, %5, %8 : vector<1x256xi32>
    %c0_i32_9 = arith.constant 0 : i32
    %10 = vector.broadcast %c0_i32_9 : i32 to vector<1x256xi32>
    %11 = arith.cmpi sgt, %4, %10 : vector<1x256xi32>
    %c15_i32_10 = arith.constant 15 : i32
    %12 = vector.broadcast %c15_i32_10 : i32 to vector<1x256xi32>
    %13 = arith.cmpi slt, %4, %12 : vector<1x256xi32>
    %14 = arith.cmpf one, %3, %3 : vector<1x256xf32>
    %cst = arith.constant dense<true> : vector<1x256xi1>
    %15 = arith.xori %14, %cst : vector<1x256xi1>
    %16 = arith.subf %1, %3 : vector<1x256xf32>
    %17 = arith.mulf %16, %16 : vector<1x256xf32>
    %cst_11 = arith.constant 0.000000e+00 : f32
    %18 = vector.broadcast %cst_11 : f32 to vector<1x256xf32>
    %19 = arith.select %15, %17, %18 : vector<1x256xi1>, vector<1x256xf32>
    %20 = vector.shape_cast %19 : vector<1x256xf32> to vector<1x1x256xf32>
    %cst_12 = arith.constant dense<0.000000e+00> : vector<1xf32>
    %21 = vector.multi_reduction <add>, %20, %cst_12 [1, 2] : vector<1x1x256xf32> to vector<1xf32>
    %22 = vector.shape_cast %21 : vector<1xf32> to vector<1x1x1xf32>
    %23 = vector.extract %22[0, 0, 0] : f32 from vector<1x1x1xf32>
    %24 = arith.extui %15 : vector<1x256xi1> to vector<1x256xi32>
    %25 = arith.sitofp %24 : vector<1x256xi32> to vector<1x256xf32>
    %26 = vector.shape_cast %25 : vector<1x256xf32> to vector<1x1x256xf32>
    %cst_13 = arith.constant dense<0.000000e+00> : vector<1xf32>
    %27 = vector.multi_reduction <add>, %26, %cst_13 [1, 2] : vector<1x1x256xf32> to vector<1xf32>
    %28 = vector.shape_cast %27 : vector<1xf32> to vector<1x1x1xf32>
    %29 = vector.extract %28[0, 0, 0] : f32 from vector<1x1x1xf32>
    %30 = arith.extui %14 : vector<1x256xi1> to vector<1x256xi32>
    %31 = arith.sitofp %30 : vector<1x256xi32> to vector<1x256xf32>
    %c16_i32 = arith.constant 16 : i32
    %32 = tpu.dynamic_rotate %31 by %c16_i32 dim 1 : vector<1x256xf32>, i32 -> vector<1x256xf32>
    %cst_14 = arith.constant 0.000000e+00 : f32
    %33 = vector.broadcast %cst_14 : f32 to vector<1x256xf32>
    %34 = arith.select %11, %32, %33 : vector<1x256xi1>, vector<1x256xf32>
    %35 = arith.addf %34, %31 : vector<1x256xf32>
    %c240_i32 = arith.constant 240 : i32
    %36 = tpu.dynamic_rotate %31 by %c240_i32 dim 1 : vector<1x256xf32>, i32 -> vector<1x256xf32>
    %cst_15 = arith.constant 0.000000e+00 : f32
    %37 = vector.broadcast %cst_15 : f32 to vector<1x256xf32>
    %38 = arith.select %13, %36, %37 : vector<1x256xi1>, vector<1x256xf32>
    %39 = arith.addf %35, %38 : vector<1x256xf32>
    %c1_i32 = arith.constant 1 : i32
    %40 = tpu.dynamic_rotate %39 by %c1_i32 dim 1 : vector<1x256xf32>, i32 -> vector<1x256xf32>
    %cst_16 = arith.constant 0.000000e+00 : f32
    %41 = vector.broadcast %cst_16 : f32 to vector<1x256xf32>
    %42 = arith.select %7, %40, %41 : vector<1x256xi1>, vector<1x256xf32>
    %43 = arith.addf %42, %39 : vector<1x256xf32>
    %c255_i32 = arith.constant 255 : i32
    %44 = tpu.dynamic_rotate %39 by %c255_i32 dim 1 : vector<1x256xf32>, i32 -> vector<1x256xf32>
    %cst_17 = arith.constant 0.000000e+00 : f32
    %45 = vector.broadcast %cst_17 : f32 to vector<1x256xf32>
    %46 = arith.select %9, %44, %45 : vector<1x256xi1>, vector<1x256xf32>
    %47 = arith.addf %43, %46 : vector<1x256xf32>
    %48 = arith.andi %11, %7 : vector<1x256xi1>
    %cst_18 = arith.constant 0.000000e+00 : f32
    %49 = vector.broadcast %cst_18 : f32 to vector<1x256xf32>
    %50 = arith.cmpf oeq, %47, %49 : vector<1x256xf32>
    %51 = arith.andi %48, %50 : vector<1x256xi1>
    %c16_i32_19 = arith.constant 16 : i32
    %52 = tpu.dynamic_rotate %16 by %c16_i32_19 dim 1 : vector<1x256xf32>, i32 -> vector<1x256xf32>
    %cst_20 = arith.constant 0.000000e+00 : f32
    %53 = vector.broadcast %cst_20 : f32 to vector<1x256xf32>
    %54 = arith.select %11, %52, %53 : vector<1x256xi1>, vector<1x256xf32>
    %c240_i32_21 = arith.constant 240 : i32
    %55 = tpu.dynamic_rotate %16 by %c240_i32_21 dim 1 : vector<1x256xf32>, i32 -> vector<1x256xf32>
    %cst_22 = arith.constant 0.000000e+00 : f32
    %56 = vector.broadcast %cst_22 : f32 to vector<1x256xf32>
    %57 = arith.select %13, %55, %56 : vector<1x256xi1>, vector<1x256xf32>
    %cst_23 = arith.constant 2.000000e+00 : f32
    %58 = vector.broadcast %cst_23 : f32 to vector<1x256xf32>
    %59 = arith.mulf %58, %16 : vector<1x256xf32>
    %60 = arith.addf %54, %59 : vector<1x256xf32>
    %61 = arith.addf %60, %57 : vector<1x256xf32>
    %62 = arith.subf %54, %57 : vector<1x256xf32>
    %c1_i32_24 = arith.constant 1 : i32
    %63 = tpu.dynamic_rotate %61 by %c1_i32_24 dim 1 : vector<1x256xf32>, i32 -> vector<1x256xf32>
    %cst_25 = arith.constant 0.000000e+00 : f32
    %64 = vector.broadcast %cst_25 : f32 to vector<1x256xf32>
    %65 = arith.select %7, %63, %64 : vector<1x256xi1>, vector<1x256xf32>
    %c255_i32_26 = arith.constant 255 : i32
    %66 = tpu.dynamic_rotate %61 by %c255_i32_26 dim 1 : vector<1x256xf32>, i32 -> vector<1x256xf32>
    %cst_27 = arith.constant 0.000000e+00 : f32
    %67 = vector.broadcast %cst_27 : f32 to vector<1x256xf32>
    %68 = arith.select %9, %66, %67 : vector<1x256xi1>, vector<1x256xf32>
    %69 = arith.subf %65, %68 : vector<1x256xf32>
    %c1_i32_28 = arith.constant 1 : i32
    %70 = tpu.dynamic_rotate %62 by %c1_i32_28 dim 1 : vector<1x256xf32>, i32 -> vector<1x256xf32>
    %cst_29 = arith.constant 0.000000e+00 : f32
    %71 = vector.broadcast %cst_29 : f32 to vector<1x256xf32>
    %72 = arith.select %7, %70, %71 : vector<1x256xi1>, vector<1x256xf32>
    %cst_30 = arith.constant 2.000000e+00 : f32
    %73 = vector.broadcast %cst_30 : f32 to vector<1x256xf32>
    %74 = arith.mulf %73, %62 : vector<1x256xf32>
    %75 = arith.addf %72, %74 : vector<1x256xf32>
    %c255_i32_31 = arith.constant 255 : i32
    %76 = tpu.dynamic_rotate %62 by %c255_i32_31 dim 1 : vector<1x256xf32>, i32 -> vector<1x256xf32>
    %cst_32 = arith.constant 0.000000e+00 : f32
    %77 = vector.broadcast %cst_32 : f32 to vector<1x256xf32>
    %78 = arith.select %9, %76, %77 : vector<1x256xi1>, vector<1x256xf32>
    %79 = arith.addf %75, %78 : vector<1x256xf32>
    %80 = arith.mulf %69, %69 : vector<1x256xf32>
    %81 = arith.mulf %79, %79 : vector<1x256xf32>
    %82 = arith.addf %80, %81 : vector<1x256xf32>
    %cst_33 = arith.constant 0.000000e+00 : f32
    %83 = vector.broadcast %cst_33 : f32 to vector<1x256xf32>
    %84 = arith.select %51, %82, %83 : vector<1x256xi1>, vector<1x256xf32>
    %85 = vector.shape_cast %84 : vector<1x256xf32> to vector<1x1x256xf32>
    %cst_34 = arith.constant dense<0.000000e+00> : vector<1xf32>
    %86 = vector.multi_reduction <add>, %85, %cst_34 [1, 2] : vector<1x1x256xf32> to vector<1xf32>
    %87 = vector.shape_cast %86 : vector<1xf32> to vector<1x1x1xf32>
    %88 = vector.extract %87[0, 0, 0] : f32 from vector<1x1x1xf32>
    %89 = arith.extui %51 : vector<1x256xi1> to vector<1x256xi32>
    %90 = arith.sitofp %89 : vector<1x256xi32> to vector<1x256xf32>
    %91 = vector.shape_cast %90 : vector<1x256xf32> to vector<1x1x256xf32>
    %cst_35 = arith.constant dense<0.000000e+00> : vector<1xf32>
    %92 = vector.multi_reduction <add>, %91, %cst_35 [1, 2] : vector<1x1x256xf32> to vector<1xf32>
    %93 = vector.shape_cast %92 : vector<1xf32> to vector<1x1x1xf32>
    %94 = vector.extract %93[0, 0, 0] : f32 from vector<1x1x1xf32>
    %c0_36 = arith.constant 0 : index
    %c0_37 = arith.constant 0 : index
    %c0_38 = arith.constant 0 : index
    %95 = memref.load %arg5[%c0_36, %c0_37, %c0_38] : memref<1x1x4xf32, #tpu.memory_space<smem>>
    memref.store %23, %arg5[%c0_36, %c0_37, %c0_38] : memref<1x1x4xf32, #tpu.memory_space<smem>>
    %c0_39 = arith.constant 0 : index
    %c0_40 = arith.constant 0 : index
    %c1 = arith.constant 1 : index
    %96 = memref.load %arg5[%c0_39, %c0_40, %c1] : memref<1x1x4xf32, #tpu.memory_space<smem>>
    memref.store %29, %arg5[%c0_39, %c0_40, %c1] : memref<1x1x4xf32, #tpu.memory_space<smem>>
    %c0_41 = arith.constant 0 : index
    %c0_42 = arith.constant 0 : index
    %c2 = arith.constant 2 : index
    %97 = memref.load %arg5[%c0_41, %c0_42, %c2] : memref<1x1x4xf32, #tpu.memory_space<smem>>
    memref.store %88, %arg5[%c0_41, %c0_42, %c2] : memref<1x1x4xf32, #tpu.memory_space<smem>>
    %c0_43 = arith.constant 0 : index
    %c0_44 = arith.constant 0 : index
    %c3 = arith.constant 3 : index
    %98 = memref.load %arg5[%c0_43, %c0_44, %c3] : memref<1x1x4xf32, #tpu.memory_space<smem>>
    memref.store %94, %arg5[%c0_43, %c0_44, %c3] : memref<1x1x4xf32, #tpu.memory_space<smem>>
    return
  }
  func.func @transform_0(%arg0: i32) -> (i32, i32) {
    %c0_i32 = arith.constant 0 : i32
    %c0_i32_0 = arith.constant 0 : i32
    %c0_i32_1 = arith.constant 0 : i32
    return %c0_i32, %c0_i32_0 : i32, i32
  }
  func.func @transform_1(%arg0: i32) -> (i32, i32) {
    %c0_i32 = arith.constant 0 : i32
    %c0_i32_0 = arith.constant 0 : i32
    %c0_i32_1 = arith.constant 0 : i32
    return %c0_i32, %c0_i32_0 : i32, i32
  }
  func.func @transform_2(%arg0: i32) -> (i32, i32, i32) {
    %c0_i32 = arith.constant 0 : i32
    %c0_i32_0 = arith.constant 0 : i32
    %c0_i32_1 = arith.constant 0 : i32
    return %arg0, %c0_i32, %c0_i32_0 : i32, i32, i32
  }
  func.func @transform_3(%arg0: i32) -> (i32, i32, i32) {
    %c0_i32 = arith.constant 0 : i32
    %c0_i32_0 = arith.constant 0 : i32
    %c0_i32_1 = arith.constant 0 : i32
    return %arg0, %c0_i32, %c0_i32_0 : i32, i32, i32
  }
  func.func @transform_4(%arg0: i32) -> (i32, i32, i32) {
    %c0_i32 = arith.constant 0 : i32
    %c0_i32_0 = arith.constant 0 : i32
    %c0_i32_1 = arith.constant 0 : i32
    return %arg0, %c0_i32, %c0_i32_0 : i32, i32, i32
  }
}

</mosaic_0001>

<bundles_post_ra>
// kernel: tpu_custom_call.1
= control target key start
LH: loop header
LB: loop body
LE: loop exit
PB: predicated region body
PF: predicated region fallthrough
CT: control target
= control target key end

     0   :  { %9 = vsyncpa [#allocation3], 0  ;;  %s1244_s0 = inlined_call_operand.hbm [shape: s32[1,256], index: 0, kind: input, shape index: {}]   ;;  %s1245_s1 = inlined_call_operand.vmem [shape: s32[1,256], index: 1, kind: input, shape index: {}]   ;;  %s1246_s2 = inlined_call_operand.vmem [shape: f32[2,1,256], index: 2, kind: input, shape index: {}]   ;;  %s1247_s3 = inlined_call_operand.vmem [shape: f32[2,1,256], index: 3, kind: input, shape index: {}]   ;;  %s1248_s4 = inlined_call_operand.hbm [shape: f32[2,1,4], index: 4, kind: output, shape index: {}]  }
   0x1   :  { %10 = vsyncpa [#allocation4], 0 }
   0x2   :  { %12 = vsyncpa [#allocation4 + $0x1], 0  ;;  %s970_s15 = smov 0   ;;  %s972_s16 = smov 0  }
   0x3   :  { %s974_s17 = smov 0   ;;  %s976_s18 = smov 0  }
   0x4 LB: > { %s991_s19 = sadd.s32 4294967295, %s935_s18   ;;  %s769_s20 = sadd.s32 4294967294, %s935_s18   ;;  %s935_s18 = sphi %s976_s18, %s1265_s18   ;;  %s931_s17 = sphi %s974_s17, %s1264_s17   ;;  %s927_s16 = sphi %s972_s16, %s1263_s16   ;;  %s923_s15 = sphi %s970_s15, %s1262_s15  }
   0x5   : > { %s995_s21 = sadd.s32 1, %s935_s18   ;;  %s119_s22 = sadd.s32 1, %s931_s17 }
   0x6   : > { %s116_s23 = ssub.s32 %s935_s18, %s995_s21  ;;  %p129_p0 = scmp.ne.s32.totalorder %s931_s17, %s927_s16 }
   0x7   : > { %p117_p1 = scmp.eq.s32.totalorder %s116_s23, 0  ;;  %p130_p2 = scmp.eq.s32.totalorder %s991_s19, 1 }
   0x8   : > { %p135_p3 = scmp.ne.s32.totalorder %s927_s16, %s923_s15  ;;  %p136_p4 = scmp.eq.s32.totalorder %s769_s20, 1 }
   0x9   : > { %s1006_s24 = scalar_select %p117_p1, %s931_s17, %s119_s22  }
   0xa   : > { %p1008_p5 = por %p130_p2, %p129_p0  ;;  %p1012_p6 = por %p136_p4, %p135_p3 }
   0xb   : > { %p770_p7 = scmp.ge.s32.totalorder %s935_s18, 1  ;;  %p143_p8 = scmp.lt.s32.totalorder %s935_s18, 3 }
   0xc   : > { %s1253_s25 = scalar_select %p1008_p5, 1, 0 }
   0xd   : > { %s1254_s26 = scalar_select %p1012_p6, 1, 0 }
   0xe   : > { %p1249_p9 = scmp.eq.s32.totalorder %s991_s19, 0  ;;  %p1019_p10 = pnand %p770_p7, %p143_p8 }
   0xf   : > { %s937_s28 = smov [#allocation2]   ;;  %s855_s7 = scalar_lea.hbm %s1244_s0, 32 }
  0x10   : > { %s1255_s27 = scalar_select %p1019_p10, 1, 0 }
  0x11   : > { %s156_s29 = sshll.u32 %s937_s28, 4  ;;  %p799_p11 = pneg %p1019_p10  ;;  %s157_s29 = int_to_ptr.vmem [resolvable:$true] %s156_s29 }
  0x12   : > { %p856_p13 = scmp.ne.s32.totalorder %s1244_s0, %s855_s7  ;;  %p862_p3 = scmp.lt.u32.totalorder %s855_s7, %s1244_s0 }
  0x13   : > { %p1027_p12 = pnand %p1249_p9, %p799_p11 }
  0x15   : > { %p857_p0 = pneg %p1027_p12 }
  0x17   : > { %p858_p1 = pnand %p857_p0, %p856_p13 }
  0x19   : > { %p859_p2 = pneg %p858_p1 }
  0x1b   : > { %p864_p4 = pnand %p862_p3, %p859_p2 }
  0x1d   : > { %867 = shalt.err (!%p864_p4)
}
  0x1e   : > { %s868_s12 = scalar_lea.vmem %s157_s29, 32  ;;  %p876_p9 = scmp.lt.s32.totalorder %s157_s29, %s157_s29 }
  0x1f   : > { %p869_p7 = scmp.ne.s32.totalorder %s157_s29, %s868_s12  ;;  %p877_p6 = scmp.lt.s32.totalorder %s868_s12, %s868_s12 }
  0x21   : > { %p871_p8 = pnand %p869_p7, %p857_p0  ;;  %p878_p5 = por %p877_p6, %p876_p9 }
  0x23   : > { %p872_p11 = pneg %p871_p8 }
  0x25   : > { %p879_p10 = pnand %p878_p5, %p872_p11 }
  0x27   : > { %882 = shalt.err (!%p879_p10)
}
  0x28   : > { %802 = dma.hbm_to_vmem [thread:$0]  (!%p1027_p12), %s1244_s0, 32, %s157_s29, [#allocation3]  }
  0x29   : > { %p1257_p13 = scmp.ne.s32.totalorder %s1255_s27, 0 }
  0x2a   : > { %p1258_p1 = scmp.eq.s32.totalorder (!%p1257_p13), %s991_s19, 0 }
  0x2b   : > { %186 = sbr.rel (%p1257_p13) target bundleno = 564 (0x234), region = 36 }
  0x32   : > { %914 = dma.done.wait (%p1258_p1), [#allocation3], 32   ;;  %p1259_p0 = pmov %p1258_p1 }
  0x33   : > { %p215_p6 = scmp.lt.s32.totalorder %s991_s19, 1  ;;  %v237_v0 = vlaneseq  ;;  %v938_v7 = vmov 0.0   ;;  %s939_s6 = smov 16   ;;  %v941_v15 = vmov 1966171168   ;;  %vm944_vm5 = vmmov 1  }
  0x34   : > { %916 = vsyncadd (%p1259_p0), [#allocation3], 4294967264  ;;  %s940_s7 = smov 112   ;;  %v311_v16 = vunpack.c.l.s4 %v941_v15  ;;  %v1094_v43 = vld [vmem:[#allocation2] sm:$0x3]  ;;  %s942_s8 = smov 1  }
  0x35   : > { %s216_s20 = scalar_select %p215_p6, %s991_s19, 1  ;;  %v238_v1 = vshrl.u32 %v237_v0, 7  ;;  %v1086_v14 = vand.u32 127, %v237_v0  ;;  %vm230_vm3 = vcmp.lt.s32.totalorder %v1094_v43, 15  ;;  %vm229_vm4 = vcmp.gt.s32.totalorder %v1094_v43, 0 }
  0x36   : > { %v312_v21 = vunpack.c.0.s8 %v311_v16  ;;  %s943_s9 = smov 127   ;;  %vm247_vm7 = vcmask 1040384   ;;  %s212_s12 = sand.u32 1, %s927_s16  }
  0x37   : > { %s776_s22 = sshll.u32 %s216_s20, 1  ;;  %v1061_v2 = vsub.s32 1, %v238_v1  ;;  %v1063_v3 = vsub.s32 0, %v238_v1  ;;  %vm304_vm1 = vcmp.lt.s32.totalorder %v1086_v14, 16  ;;  %vm331_vm2 = vcmp.lt.s32.totalorder %v1086_v14, 112  ;;  %s775_s13 = sshll.u32 %s212_s12, 7 }
  0x38   : > { %s218_s29 = scalar_lea.vmem %s1246_s2, %s776_s22  ;;  %s222_s5 = scalar_lea.vmem %s1247_s3, %s776_s22  ;;  %v1089_v28 = vsub.s32 %v312_v21, %v238_v1  ;;  %vm369_vm8 = vcmp.lt.s32.totalorder %v1086_v14, 1  ;;  %vm396_vm9 = vcmp.lt.s32.totalorder %v1086_v14, 127 }
  0x39   : > { %v223_v4 = vld [vmem:[%s218_s29] sm:$0x3]  ;;  %s1202_s20 = scalar_lea.smem [#allocation5], %s775_s13  ;;  %s782_s30 = sshll.u32 %s991_s19, 4 }
  0x3a   : > { %v1065_v5 = vld [vmem:[%s222_s5] sm:$0x3]  ;;  %s667_s22 = scalar_lea.smem %s1202_s20, 1 [#allocation5]  ;;  %s669_s28 = scalar_lea.smem %s1202_s20, 2 [#allocation5] }
  0x3b   : > { %v1068_v6 = vsub.f32 %v223_v4, %v1065_v5  ;;  %vm231_vm0 = vcmp.ne.f32.partialorder %v1065_v5, %v1065_v5  ;;  %s671_s27 = scalar_lea.smem %s1202_s20, 3 [#allocation5]  ;;  %p1260_p9 = scmp.ne.s32.totalorder %s1253_s25, 0 }
  0x3c   : > { %v1076_v8 = vsel %vm231_vm0, 1.0, %v938_v7  ;;  %vm232_vm6 = vmxor %vm231_vm0, %vm944_vm5 }
  0x3d   : > { %v430_v9 = vrot.slane %v1068_v6, %v1061_v2  ;;  %v291_v10 = vrot.slane %v1076_v8, %v1063_v3  ;;  %v295_v11 = vrot.slane %v1076_v8, %v1061_v2  ;;  %v426_v13 = vrot.slane %v1068_v6, %v1063_v3 }
  0x3e   : > { %v483_v58 = vmul.f32 2.0, %v1068_v6  ;;  %v234_v4 = vmul.f32 %v1068_v6, %v1068_v6 }
  0x3f   : > { %435 = vrot.lane.b32.xlu1 %v430_v9, %s939_s6  ;;  %v845_v12 = vpack.i.bf16 %v295_v11, %v291_v10  ;;  %v778_v11 = vsel %vm232_vm6, 1.0, %v938_v7 }
  0x40   : > { %v266_v15 = vrot.slane %v778_v11, %v1063_v3  ;;  %v270_v6 = vrot.slane %v778_v11, %v1061_v2 }
  0x41   : > { %846 = vrot.lane.b32.xlu0 %v845_v12, %s939_s6 }
  0x42   : > { %v273_v5 = vsel %vm247_vm7, %v266_v15, 0.0 }
  0x43   : > { %458 = vrot.lane.b32.xlu1 %v426_v13, %s940_s7 }
  0x45   : > { %433 = vrot.lane.b32.xlu0 %v426_v13, %s939_s6 }
  0x47   : > { %851 = vrot.lane.b32.xlu1 %v845_v12, %s940_s7 }
  0x49   : > { %460 = vrot.lane.b32.xlu0 %v430_v9, %s940_s7  ;;  %s685_s7 = scalar_lea.hbm %s1248_s4, %s782_s30 }
  0x4a   : > { %s883_s10 = scalar_lea.hbm %s685_s7, 16  ;;  %p888_p2 = scmp.lt.u32.totalorder %s685_s7, %s1248_s4 }
  0x4b   : > { %p884_p5 = scmp.ne.s32.totalorder %s685_s7, %s883_s10  ;;  %p891_p7 = scmp.lt.u32.totalorder %s883_s10, %s685_s7 }
  0x4d   : > { %p885_p10 = pnand %p884_p5, %p1260_p9 }
  0x4f   : > { %p886_p12 = pneg %p885_p10 }
  0xb1   : > { %v436_v17 = vpop.permute.xlu1 %435 }
  0xb3   : > { %v847_v18 = vpop.permute.xlu0 %846 }
  0xb4   : > { %v849_v19 = vunpack.i.h.bf16 %v847_v18  ;;  %v848_v20 = vunpack.i.l.bf16 %v847_v18 }
  0xb5   : > { %v459_v22 = vpop.permute.xlu1 %458 }
  0xb6   : > { %v305_v23 = vsel %vm304_vm1, %v848_v20, %v849_v19  ;;  %v306_v24 = vsel %vm304_vm1, %v849_v19, %v848_v20 }
  0xb7   : > { %v434_v25 = vpop.permute.xlu0 %433  ;;  %v309_v29 = vcombine.low %v306_v24, %v305_v23 }
  0xb8   : > { %v437_v26 = vsel %vm304_vm1, %v434_v25, %v436_v17  ;;  %v438_v27 = vsel %vm304_vm1, %v436_v17, %v434_v25  ;;  %v274_v17 = vsel %vm247_vm7, %v270_v6, 0.0 }
  0xb9   : > { %v441_v30 = vcombine.low %v438_v27, %v437_v26  ;;  %v852_v31 = vpop.permute.xlu1 %851  ;;  %v316_v40 = vrot.slane %v309_v29, %v1089_v28  ;;  %v275_v18 = vadd.f32 %v274_v17, %v273_v5 }
  0xba   : > { %v854_v32 = vunpack.i.h.bf16 %v852_v31  ;;  %v853_v33 = vunpack.i.l.bf16 %v852_v31 }
  0xbb   : > { %v448_v34 = vrot.slane %v441_v30, %v1089_v28  ;;  %v461_v35 = vpop.permute.xlu0 %460  ;;  %v323_v48 = vrot.slane %v316_v40, %v1089_v28  ;;  %v226_v40 = vld [vmem:[%s1245_s1] sm:$0x3] }
  0xbc   : > { %v332_v36 = vsel %vm331_vm2, %v853_v33, %v854_v32  ;;  %v333_v37 = vsel %vm331_vm2, %v854_v32, %v853_v33  ;;  %v462_v38 = vsel %vm331_vm2, %v459_v22, %v461_v35  ;;  %v463_v39 = vsel %vm331_vm2, %v461_v35, %v459_v22 }
  0xbd   : > { %v336_v41 = vcombine.low %v332_v36, %v333_v37  ;;  %v466_v42 = vcombine.low %v462_v38, %v463_v39  ;;  %v455_v44 = vrot.slane %v448_v34, %v1089_v28  ;;  %v325_v53 = vsel %vm229_vm4, %v323_v48, 0.0 }
  0xbe   : > { %v326_v57 = vadd.f32 %v1076_v8, %v325_v53  ;;  %v235_v8 = vsel %vm232_vm6, %v234_v4, 0.0  ;;  %vm227_vm10 = vcmp.gt.s32.totalorder %v226_v40, 0  ;;  %vm228_vm11 = vcmp.lt.s32.totalorder %v226_v40, 15 }
  0xbf   : > { %v343_v45 = vrot.slane %v336_v41, %v1089_v28  ;;  %v473_v46 = vrot.slane %v466_v42, %v1089_v28  ;;  %v457_v49 = vsel %vm229_vm4, %v455_v44, 0.0  ;;  %v240_v9 = vrot.slane %v235_v8, %v1063_v3  ;;  %vm419_vm12 = vmand %vm229_vm4, %vm227_vm10 }
  0xc0   : > { %v484_v60 = vadd.f32 %v483_v58, %v457_v49  ;;  %v244_v10 = vrot.slane %v235_v8, %v1061_v2 }
  0xc1   : > { %v480_v47 = vrot.slane %v473_v46, %v1089_v28  ;;  %v350_v51 = vrot.slane %v343_v45, %v1089_v28  ;;  %v248_v12 = vsel %vm247_vm7, %v240_v9, 0.0 }
  0xc2   : > { %v249_v13 = vsel %vm247_vm7, %v244_v10, 0.0 }
  0xc3   : > { %v482_v50 = vsel %vm230_vm3, %v480_v47, 0.0  ;;  %v352_v56 = vsel %vm230_vm3, %v350_v51, 0.0  ;;  %v250_v16 = vadd.f32 %v249_v13, %v248_v12 }
  0xc4   : > { %v1106_v52 = vsub.f32 %v457_v49, %v482_v50  ;;  %v1116_v59 = vadd.f32 %v352_v56, %v326_v57  ;;  %v485_v63 = vadd.f32 %v484_v60, %v482_v50 }
  0xc6   : > { %v557_v54 = vrot.slane %v1106_v52, %v1061_v2  ;;  %v553_v55 = vrot.slane %v1106_v52, %v1063_v3  ;;  %v362_v61 = vrot.slane %v1116_v59, %v1061_v2  ;;  %v358_v62 = vrot.slane %v1116_v59, %v1063_v3 }
  0xc7   : > { %v495_v0 = vrot.slane %v485_v63, %v1061_v2  ;;  %v491_v1 = vrot.slane %v485_v63, %v1063_v3 }
  0xc8   : > { %562 = vrot.lane.b32.xlu1 %v557_v54, %s942_s8  ;;  %560 = vrot.lane.b32.xlu0 %v553_v55, %s942_s8 }
  0xcc   : > { %589 = vrot.lane.b32.xlu1 %v557_v54, %s943_s9  ;;  %587 = vrot.lane.b32.xlu0 %v553_v55, %s943_s9 }
  0xd0   : > { %367 = vrot.lane.b32.xlu1 %v362_v61, %s942_s8  ;;  %365 = vrot.lane.b32.xlu0 %v358_v62, %s942_s8 }
  0xd4   : > { %500 = vrot.lane.b32.xlu1 %v495_v0, %s942_s8  ;;  %498 = vrot.lane.b32.xlu0 %v491_v1, %s942_s8 }
  0xd8   : > { %525 = vrot.lane.b32.xlu1 %v495_v0, %s943_s9  ;;  %523 = vrot.lane.b32.xlu0 %v491_v1, %s943_s9 }
  0xdc   : > { %394 = vrot.lane.b32.xlu1 %v362_v61, %s943_s9  ;;  %392 = vrot.lane.b32.xlu0 %v358_v62, %s943_s9  ;;  %v585_v61 = vmul.f32 2.0, %v1106_v52  ;;  %s674_s9 = scalar_lea.sflag [#allocation4], %s212_s12 }
  0xfb   : > { %251 = vadd.xlane.f32.xlu0 %v250_v16 }
 0x100   : > { %276 = vadd.xlane.f32.xlu1 %v275_v18 }
 0x13a   : > { %v563_v19 = vpop.permute.xlu1 %562  ;;  %v561_v20 = vpop.permute.xlu0 %560 }
 0x13b   : > { %v564_v23 = vsel %vm369_vm8, %v561_v20, %v563_v19  ;;  %v565_v24 = vsel %vm369_vm8, %v563_v19, %v561_v20 }
 0x13c   : > { %v568_v27 = vcombine.low %v565_v24, %v564_v23 }
 0x13e   : > { %v590_v21 = vpop.permute.xlu1 %589  ;;  %v588_v22 = vpop.permute.xlu0 %587  ;;  %v575_v34 = vrot.slane %v568_v27, %v1089_v28 }
 0x13f   : > { %v591_v25 = vsel %vm396_vm9, %v588_v22, %v590_v21  ;;  %v592_v26 = vsel %vm396_vm9, %v590_v21, %v588_v22 }
 0x140   : > { %v595_v33 = vcombine.low %v591_v25, %v592_v26  ;;  %v582_v44 = vrot.slane %v575_v34, %v1089_v28 }
 0x142   : > { %v368_v29 = vpop.permute.xlu1 %367  ;;  %v366_v30 = vpop.permute.xlu0 %365  ;;  %v602_v41 = vrot.slane %v595_v33, %v1089_v28  ;;  %v584_v54 = vsel %vm227_vm10, %v582_v44, 0.0 }
 0x143   : > { %v370_v31 = vsel %vm369_vm8, %v366_v30, %v368_v29  ;;  %v371_v32 = vsel %vm369_vm8, %v368_v29, %v366_v30  ;;  %v586_v8 = vadd.f32 %v585_v61, %v584_v54 }
 0x144   : > { %v374_v35 = vcombine.low %v371_v32, %v370_v31  ;;  %v609_v51 = vrot.slane %v602_v41, %v1089_v28 }
 0x146   : > { %v501_v36 = vpop.permute.xlu1 %500  ;;  %v499_v37 = vpop.permute.xlu0 %498  ;;  %v381_v45 = vrot.slane %v374_v35, %v1089_v28  ;;  %v611_v0 = vsel %vm228_vm11, %v609_v51, 0.0 }
 0x147   : > { %v502_v38 = vsel %vm369_vm8, %v499_v37, %v501_v36  ;;  %v503_v39 = vsel %vm369_vm8, %v501_v36, %v499_v37  ;;  %v612_v12 = vadd.f32 %v611_v0, %v586_v8 }
 0x148   : > { %v506_v42 = vcombine.low %v503_v39, %v502_v38  ;;  %v388_v55 = vrot.slane %v381_v45, %v1089_v28 }
 0x149   : > { %v614_v17 = vmul.f32 %v612_v12, %v612_v12 }
 0x14a   : > { %v513_v46 = vrot.slane %v506_v42, %v1089_v28  ;;  %v526_v47 = vpop.permute.xlu1 %525  ;;  %v524_v48 = vpop.permute.xlu0 %523  ;;  %v390_v9 = vsel %vm227_vm10, %v388_v55, 0.0 }
 0x14b   : > { %v527_v49 = vsel %vm396_vm9, %v524_v48, %v526_v47  ;;  %v528_v50 = vsel %vm396_vm9, %v526_v47, %v524_v48  ;;  %v391_v14 = vadd.f32 %v390_v9, %v1116_v59 }
 0x14c   : > { %v531_v53 = vcombine.low %v527_v49, %v528_v50  ;;  %v520_v56 = vrot.slane %v513_v46, %v1089_v28 }
 0x14e   : > { %v538_v57 = vrot.slane %v531_v53, %v1089_v28  ;;  %v395_v58 = vpop.permute.xlu1 %394  ;;  %v393_v60 = vpop.permute.xlu0 %392  ;;  %v522_v10 = vsel %vm227_vm10, %v520_v56, 0.0 }
 0x14f   : > { %v397_v62 = vsel %vm396_vm9, %v393_v60, %v395_v58  ;;  %v398_v63 = vsel %vm396_vm9, %v395_v58, %v393_v60 }
 0x150   : > { %v545_v1 = vrot.slane %v538_v57, %v1089_v28  ;;  %v401_v4 = vcombine.low %v397_v62, %v398_v63 }
 0x152   : > { %v547_v11 = vsel %vm228_vm11, %v545_v1, 0.0  ;;  %v408_v52 = vrot.slane %v401_v4, %v1089_v28 }
 0x153   : > { %v548_v13 = vsub.f32 %v522_v10, %v547_v11 }
 0x154   : > { %v415_v15 = vrot.slane %v408_v52, %v1089_v28 }
 0x155   : > { %v613_v6 = vmul.f32 %v548_v13, %v548_v13 }
 0x156   : > { %v417_v16 = vsel %vm228_vm11, %v415_v15, 0.0 }
 0x157   : > { %v418_v5 = vadd.f32 %v417_v16, %v391_v14  ;;  %v615_v18 = vadd.f32 %v614_v17, %v613_v6 }
 0x159   : > { %vm420_vm13 = vcmp.eq.f32.partialorder %v418_v5, 0.0 }
 0x15a   : > { %vm421_vm14 = vmand %vm419_vm12, %vm420_vm13 }
 0x15b   : > { %v616_v19 = vsel %vm421_vm14, %v615_v18, 0.0  ;;  %v780_v20 = vsel %vm421_vm14, 1.0, %v938_v7 }
 0x15c   : > { %v621_v21 = vrot.slane %v616_v19, %v1063_v3  ;;  %v625_v28 = vrot.slane %v616_v19, %v1061_v2  ;;  %v646_v59 = vrot.slane %v780_v20, %v1063_v3  ;;  %v650_v22 = vrot.slane %v780_v20, %v1061_v2 }
 0x15e   : > { %v628_v23 = vsel %vm247_vm7, %v621_v21, 0.0  ;;  %v629_v43 = vsel %vm247_vm7, %v625_v28, 0.0  ;;  %v653_v25 = vsel %vm247_vm7, %v646_v59, 0.0  ;;  %v654_v26 = vsel %vm247_vm7, %v650_v22, 0.0 }
 0x15f   : > { %v630_v24 = vadd.f32 %v629_v43, %v628_v23  ;;  %v655_v27 = vadd.f32 %v654_v26, %v653_v25 }
 0x161   : > { %631 = vadd.xlane.f32.xlu0 %v630_v24 }
 0x165   : > { %656 = vadd.xlane.f32.xlu0 %v655_v27 }
 0x188   : > { %v252_v7 = vpop.xlane.xlu0 %251 }
 0x189   : > { %v253_v29 = vrot.slane %v252_v7, 4 }
 0x18b   : > { %v254_v30 = vadd.f32 %v253_v29, %v252_v7 }
 0x18d   : > { %v255_v3 = vrot.slane %v254_v30, 2  ;;  %v277_v31 = vpop.xlane.xlu1 %276 }
 0x18e   : > { %v278_v2 = vrot.slane %v277_v31, 4 }
 0x18f   : > { %v256_v32 = vadd.f32 %v255_v3, %v254_v30 }
 0x190   : > { %v279_v33 = vadd.f32 %v278_v2, %v277_v31 }
 0x191   : > { %v257_v34 = vrot.slane %v256_v32, 1 }
 0x192   : > { %v280_v35 = vrot.slane %v279_v33, 2 }
 0x193   : > { %v258_v36 = vadd.f32 %v257_v34, %v256_v32 }
 0x194   : > { %v281_v37 = vadd.f32 %v280_v35, %v279_v33 }
 0x195   : > { %785 = vpush %v258_v36 }
 0x196   : > { %v282_v38 = vrot.slane %v281_v37, 1 }
 0x198   : > { %v283_v39 = vadd.f32 %v282_v38, %v281_v37 }
 0x19a   : > { %787 = vpush %v283_v39 }
 0x1c6   : > { %s786_s14 = spop %785 }
 0x1c7   : > { %666 = sst [smem:[%s1202_s20]] %s786_s14  ;;  %s887_s14 = scalar_lea.hbm %s1248_s4, 32 }
 0x1c8   : > { %p889_p3 = scmp.lt.u32.totalorder %s887_s14, %s883_s10 }
 0x1ca   : > { %p890_p4 = por %p889_p3, %p888_p2 }
 0x1cb   : > { %s788_s23 = spop %787 }
 0x1cc   : > { %668 = sst [smem:[%s667_s22]] %s788_s23  ;;  %p892_p8 = por %p891_p7, %p890_p4 }
 0x1ce   : > { %p893_p11 = pnand %p892_p8, %p886_p12 }
 0x1ee   : > { %v632_v40 = vpop.xlane.xlu0 %631 }
 0x1ef   : > { %v633_v41 = vrot.slane %v632_v40, 4 }
 0x1f1   : > { %v634_v42 = vadd.f32 %v633_v41, %v632_v40 }
 0x1f2   : > { %v657_v44 = vpop.xlane.xlu0 %656 }
 0x1f3   : > { %v635_v45 = vrot.slane %v634_v42, 2  ;;  %v658_v46 = vrot.slane %v657_v44, 4 }
 0x1f5   : > { %v659_v47 = vadd.f32 %v658_v46, %v657_v44  ;;  %v636_v48 = vadd.f32 %v635_v45, %v634_v42 }
 0x1f7   : > { %v660_v49 = vrot.slane %v659_v47, 2  ;;  %v637_v50 = vrot.slane %v636_v48, 1 }
 0x1f9   : > { %v661_v51 = vadd.f32 %v660_v49, %v659_v47  ;;  %v638_v53 = vadd.f32 %v637_v50, %v636_v48 }
 0x1fb   : > { %789 = vpush %v638_v53  ;;  %v662_v54 = vrot.slane %v661_v51, 1 }
 0x1fd   : > { %v663_v55 = vadd.f32 %v662_v54, %v661_v51 }
 0x1ff   : > { %791 = vpush %v663_v55 }
 0x22c   : > { %s790_s29 = spop %789 }
 0x22d   : > { %670 = sst [smem:[%s669_s28]] %s790_s29 }
 0x230   : > { %s792_s8 = spop %791 }
 0x231   : > { %672 = sst [smem:[%s671_s27]] %s792_s8 }
 0x232   : > { %896 = shalt.err (!%p893_p11)
}
 0x233   : > { %797 = dma.smem_to_hbm (%p1260_p9), %s1202_s20, 16, %s685_s7, %s674_s9  }
 0x234 PF: > { %p784_p13 = scmp.lt.s32.totalorder %s935_s18, 2 }
 0x235   : > { %s697_s12 = sand.u32 (!%p784_p13), 1, %s923_s15   ;;  %p1261_p1 = scmp.ne.s32.totalorder (!%p784_p13), %s1254_s26, 0 }
 0x236   : > { %692 = sbr.rel (%p784_p13) target bundleno = 576 (0x240), region = 48  ;;  %s698_s23 = scalar_lea.sflag (!%p784_p13), [#allocation4], %s697_s12 }
 0x23d   : > { %918 = dma.done.wait (%p1261_p1), %s698_s23, 16  }
 0x23e   : > { %920 = vsyncadd (%p1261_p1), %s698_s23, 4294967280 }
 0x23f   : > { %703 = sfence }
 0x240 PF: > { %p15_p0 = scmp.ge.s32.totalorder %s995_s21, 4   ;;  %s1262_s15 = smov %s927_s16 }
 0x241   : > { %s1263_s16 = smov %s931_s17  ;;  %s1264_s17 = smov %s1006_s24 }
 0x242   : > { %s1265_s18 = smov %s995_s21  ;;  %17 = sbr.rel (!%p15_p0) target bundleno = 4 (0x4), region = 83 }
 0x249   :  { %704 = vsyncpa [#allocation3], 1 }
 0x24a   :  { %706 = vsyncpa [#allocation3 + $0x1], 1 }
 0x24b   :  { %707 = vsyncpa [#allocation4], 1 }
 0x24c   :  { %709 = vsyncpa [#allocation4 + $0x1], 1 }

</bundles_post_ra>
